<compile_context>
chip_gen: v7x
topology: tpu7x:2x2x1
jax: 0.10.0
libtpu: 0.0.40
codegen_flags: <defaults>
</compile_context>

<pallas_src>
import jax
import jax.numpy as jnp
from jax.experimental import pallas as pl
from jax.experimental.pallas import tpu as pltpu


def attention2_kernel(xe_ref, wt_ref, b_ref, c_ref, out_ref):
    # xe_ref: (B*S, D) bf16   concatenated [x, extension], all instances stacked
    # wt_ref: (D, D)   bf16   weight pre-transposed to (in_features, out_features)
    # b_ref:  (1, D)   f32    bias
    # c_ref:  (1, D)   f32    context vector
    # out_ref:(B, S)   f32    per-instance softmax attention weights
    B, S = out_ref.shape

    # h = cat(x, ext) @ W^T + b   (single MXU push, f32 accumulation)
    h = jnp.dot(xe_ref[...], wt_ref[...],
                preferred_element_type=jnp.float32)          # (B*S, D) f32
    h = jnp.tanh(h + b_ref[...])                             # f32 tanh (EUP)

    D = h.shape[-1]
    h3 = h.reshape(B, S, D)                                   # leading-dim split, layout-free

    # scores[b, s] = <h[b, s, :], c>  -- VPU multiply + XLU lane reduction
    c = c_ref[...]                                            # (1, D)
    scores = jnp.sum(h3 * c[None, :, :], axis=-1)             # (B, S) f32

    # Numerically-stable softmax over the sequence axis, exact normalization.
    m = jnp.max(scores, axis=-1, keepdims=True)
    p = jnp.exp(scores - m)
    out_ref[...] = p / jnp.sum(p, axis=-1, keepdims=True)


def attention2_forward_batched(x, extension, weight, bias, context_vector):
    """Batched forward.

    x:         (B, S, D1)
    extension: (B, S, D2)
    weight:    (D, D)  PyTorch Linear convention (out_features, in_features)
    bias:      (D,)
    context:   (D,)
    returns:   (B, 1, S) softmax attention weights (each row matches the module).
    """
    B, S, D1 = x.shape
    D2 = extension.shape[-1]
    D = D1 + D2

    # Host-side prep (tiny, fuses in XLA): concat features, flatten batch,
    # transpose weight once, cast MXU operands to bf16.
    xe = jnp.concatenate([x, extension], axis=-1).reshape(B * S, D)
    xe = xe.astype(jnp.bfloat16)
    wt = weight.T.astype(jnp.bfloat16)                 # (in_features, out_features)
    b2 = bias.reshape(1, D).astype(jnp.float32)
    c2 = context_vector.reshape(1, D).astype(jnp.float32)

    out = pl.pallas_call(
        attention2_kernel,
        out_shape=jax.ShapeDtypeStruct((B, S), jnp.float32),
        grid=(1,),
        in_specs=[
            pl.BlockSpec((B * S, D), lambda i: (0, 0)),   # all instances, one block
            pl.BlockSpec((D, D), lambda i: (0, 0)),       # weight (resident)
            pl.BlockSpec((1, D), lambda i: (0, 0)),       # bias
            pl.BlockSpec((1, D), lambda i: (0, 0)),       # context vector
        ],
        out_specs=pl.BlockSpec((B, S), lambda i: (0, 0)), # one lane slab, one store
        compiler_params=pltpu.CompilerParams(
            dimension_semantics=("arbitrary",)),
    )(xe, wt, b2, c2)

    return out.reshape(B, 1, S)


def attention2_forward(x, extension, weight, bias, context_vector):
    """Module-equivalent (unbatched) forward: x (S, D1), extension (S, D2) -> (1, S)."""
    out = attention2_forward_batched(x[None], extension[None],
                                     weight, bias, context_vector)
    return out[0]


def attention2_reference(x, extension, weight, bias, context_vector):
    out = jnp.concatenate([x, extension], axis=1) @ weight.T + bias
    out = jnp.tanh(out)
    out = out @ context_vector
    return jax.nn.softmax(out.reshape(1, -1), axis=1)


if __name__ == "__main__":
    # Small, module-consistent shapes: batch=4 instances, seq=8, input_size=32 (16+16).
    B, S, D1, D2 = 4, 8, 16, 16
    D = D1 + D2  # input_size

    key = jax.random.PRNGKey(0)
    kx, ke, kw, kb, kc = jax.random.split(key, 5)

    x = jax.random.normal(kx, (B, S, D1), dtype=jnp.float32)
    extension = jax.random.normal(ke, (B, S, D2), dtype=jnp.float32)

    weight = jax.random.normal(kw, (D, D), dtype=jnp.float32) * 0.1
    bias = jax.random.normal(kb, (D,), dtype=jnp.float32) * 0.1
    context_vector = jax.random.normal(kc, (D,), dtype=jnp.float32) * 0.1

    # Batched kernel call (whole batch in a single grid step).
    out_b = attention2_forward_batched(x, extension, weight, bias, context_vector)
    out_b = jax.block_until_ready(out_b)
    assert out_b.shape == (B, 1, S)

    # bf16 MXU inputs => compare against the f32 reference with loosened tolerance.
    for b in range(B):
        ref = attention2_reference(x[b], extension[b], weight, bias, context_vector)
        assert jnp.allclose(out_b[b], ref, atol=2e-2, rtol=2e-2), f"mismatch at b={b}"
        # Exact softmax normalization (no approx reciprocal): rows sum to 1.
        assert jnp.allclose(jnp.sum(out_b[b]), 1.0, atol=1e-5), f"not normalized at b={b}"

    # Module-equivalent single-instance path.
    out_1 = attention2_forward(x[0], extension[0], weight, bias, context_vector)
    out_1 = jax.block_until_ready(out_1)
    ref_1 = attention2_reference(x[0], extension[0], weight, bias, context_vector)
    assert out_1.shape == (1, S)
    assert jnp.allclose(out_1, ref_1, atol=2e-2, rtol=2e-2), "mismatch (unbatched)"

    print("KERNEL_OK")
</pallas_src>

<mosaic_0001>
module attributes {stable_mosaic.version = 11 : i64} {
  func.func @attention2_kernel(%arg0: i32, %arg1: memref<32x32xbf16, #tpu.memory_space<vmem>>, %arg2: memref<32x32xbf16, #tpu.memory_space<vmem>>, %arg3: memref<1x32xf32, #tpu.memory_space<vmem>>, %arg4: memref<1x32xf32, #tpu.memory_space<vmem>>, %arg5: memref<4x8xf32, #tpu.memory_space<vmem>>) attributes {dimension_semantics = [#tpu.dimension_semantics<arbitrary>], iteration_bounds = array<i64: 1>, scalar_prefetch = 0 : i64, scratch_operands = 0 : i64, tpu.core_type = #tpu.core_type<tc>, window_params = [{pipeline_mode = #tpu.pipeline_mode<synchronous>, transform_indices = @transform_0, window_bounds = array<i64: 32, 32>}, {pipeline_mode = #tpu.pipeline_mode<synchronous>, transform_indices = @transform_1, window_bounds = array<i64: 32, 32>}, {pipeline_mode = #tpu.pipeline_mode<synchronous>, transform_indices = @transform_2, window_bounds = array<i64: 1, 32>}, {pipeline_mode = #tpu.pipeline_mode<synchronous>, transform_indices = @transform_3, window_bounds = array<i64: 1, 32>}, {pipeline_mode = #tpu.pipeline_mode<synchronous>, transform_indices = @transform_4, window_bounds = array<i64: 4, 8>}]} {
    %c0 = arith.constant 0 : index
    %c0_0 = arith.constant 0 : index
    %0 = vector.load %arg1[%c0, %c0_0] : memref<32x32xbf16, #tpu.memory_space<vmem>>, vector<32x32xbf16>
    %c0_1 = arith.constant 0 : index
    %c0_2 = arith.constant 0 : index
    %1 = vector.load %arg2[%c0_1, %c0_2] : memref<32x32xbf16, #tpu.memory_space<vmem>>, vector<32x32xbf16>
    %cst = arith.constant dense<0.000000e+00> : vector<32x32xf32>
    %2 = tpu.matmul %0, %1, %cst {dimension_numbers = #tpu.dot_dimension_numbers<[1], [0], [0], [1], [0, 0, 1, 1], [], []>} : vector<32x32xbf16>, vector<32x32xbf16>, vector<32x32xf32> -> vector<32x32xf32>
    %c0_3 = arith.constant 0 : index
    %c0_4 = arith.constant 0 : index
    %3 = vector.load %arg3[%c0_3, %c0_4] : memref<1x32xf32, #tpu.memory_space<vmem>>, vector<1x32xf32>
    %4 = vector.broadcast %3 : vector<1x32xf32> to vector<32x32xf32>
    %5 = arith.addf %2, %4 : vector<32x32xf32>
    %6 = math.tanh %5 : vector<32x32xf32>
    %7 = vector.shape_cast %6 : vector<32x32xf32> to vector<4x8x32xf32>
    %c0_5 = arith.constant 0 : index
    %c0_6 = arith.constant 0 : index
    %8 = vector.load %arg4[%c0_5, %c0_6] : memref<1x32xf32, #tpu.memory_space<vmem>>, vector<1x32xf32>
    %9 = vector.shape_cast %8 : vector<1x32xf32> to vector<1x1x32xf32>
    %10 = vector.broadcast %9 : vector<1x1x32xf32> to vector<4x8x32xf32>
    %11 = arith.mulf %7, %10 : vector<4x8x32xf32>
    %cst_7 = arith.constant dense<0.000000e+00> : vector<4x8xf32>
    %12 = vector.multi_reduction <add>, %11, %cst_7 [2] : vector<4x8x32xf32> to vector<4x8xf32>
    %cst_8 = arith.constant dense<0xFF800000> : vector<4xf32>
    %13 = vector.multi_reduction <maximumf>, %12, %cst_8 [1] : vector<4x8xf32> to vector<4xf32>
    %14 = vector.shape_cast %13 : vector<4xf32> to vector<4x1xf32>
    %15 = vector.broadcast %14 : vector<4x1xf32> to vector<4x8xf32>
    %16 = arith.subf %12, %15 : vector<4x8xf32>
    %17 = math.exp %16 : vector<4x8xf32>
    %cst_9 = arith.constant dense<0.000000e+00> : vector<4xf32>
    %18 = vector.multi_reduction <add>, %17, %cst_9 [1] : vector<4x8xf32> to vector<4xf32>
    %19 = vector.shape_cast %18 : vector<4xf32> to vector<4x1xf32>
    %20 = vector.broadcast %19 : vector<4x1xf32> to vector<4x8xf32>
    %21 = arith.divf %17, %20 : vector<4x8xf32>
    %c0_10 = arith.constant 0 : index
    %c0_11 = arith.constant 0 : index
    %22 = vector.load %arg5[%c0_10, %c0_11] : memref<4x8xf32, #tpu.memory_space<vmem>>, vector<4x8xf32>
    tpu.vector_store %arg5[%c0_10, %c0_11], %21 {strides = array<i32>} : memref<4x8xf32, #tpu.memory_space<vmem>>, vector<4x8xf32>,
    return
  }
  func.func @transform_0(%arg0: i32) -> (i32, i32) {
    %c0_i32 = arith.constant 0 : i32
    %c0_i32_0 = arith.constant 0 : i32
    %c0_i32_1 = arith.constant 0 : i32
    return %c0_i32, %c0_i32_0 : i32, i32
  }
  func.func @transform_1(%arg0: i32) -> (i32, i32) {
    %c0_i32 = arith.constant 0 : i32
    %c0_i32_0 = arith.constant 0 : i32
    %c0_i32_1 = arith.constant 0 : i32
    return %c0_i32, %c0_i32_0 : i32, i32
  }
  func.func @transform_2(%arg0: i32) -> (i32, i32) {
    %c0_i32 = arith.constant 0 : i32
    %c0_i32_0 = arith.constant 0 : i32
    %c0_i32_1 = arith.constant 0 : i32
    return %c0_i32, %c0_i32_0 : i32, i32
  }
  func.func @transform_3(%arg0: i32) -> (i32, i32) {
    %c0_i32 = arith.constant 0 : i32
    %c0_i32_0 = arith.constant 0 : i32
    %c0_i32_1 = arith.constant 0 : i32
    return %c0_i32, %c0_i32_0 : i32, i32
  }
  func.func @transform_4(%arg0: i32) -> (i32, i32) {
    %c0_i32 = arith.constant 0 : i32
    %c0_i32_0 = arith.constant 0 : i32
    %c0_i32_1 = arith.constant 0 : i32
    return %c0_i32, %c0_i32_0 : i32, i32
  }
}

</mosaic_0001>

<bundles_post_ra>
// kernel: tpu_custom_call.1
= control target key start
LH: loop header
LB: loop body
LE: loop exit
PB: predicated region body
PF: predicated region fallthrough
CT: control target
= control target key end

     0   :  { %9 = vsyncpa [#allocation3], 0  ;;  %s594_s0 = inlined_call_operand.hbm [shape: bf16[32,32], index: 0, kind: input, shape index: {}]   ;;  %s595_s1 = inlined_call_operand.hbm [shape: bf16[32,32], index: 1, kind: input, shape index: {}]   ;;  %s596_s2 = inlined_call_operand.vmem [shape: f32[1,32], index: 2, kind: input, shape index: {}]   ;;  %s597_s3 = inlined_call_operand.vmem [shape: f32[1,32], index: 3, kind: input, shape index: {}]   ;;  %s598_s4 = inlined_call_operand.hbm [shape: f32[4,8], index: 4, kind: output, shape index: {}]  }
   0x1   :  { %10 = vsyncpa [#allocation6], 0 }
   0x2   :  { %11 = vsyncpa [#allocation4], 0  ;;  %s482_s15 = smov [#allocation2]   ;;  %s410_s19 = scalar_lea.hbm %s594_s0, 256 }
   0x3   :  { %s17_s16 = sshll.u32 %s482_s15, 4  ;;  %p411_p0 = scmp.ne.s32.totalorder %s594_s0, %s410_s19  ;;  %s18_s16 = int_to_ptr.vmem [resolvable:$true] %s17_s16 }
   0x4   :  { %p414_p1 = scmp.lt.u32.totalorder %s410_s19, %s594_s0 }
   0x6   :  { %p416_p2 = pnand %p414_p1, %p411_p0 }
   0x8   :  { %419 = shalt.err (!%p416_p2)
}
   0x9   :  { %s420_s24 = scalar_lea.vmem %s18_s16, 256  ;;  %p425_p4 = scmp.lt.s32.totalorder %s18_s16, %s18_s16 }
   0xa   :  { %p421_p3 = scmp.ne.s32.totalorder %s18_s16, %s420_s24  ;;  %p426_p5 = scmp.lt.s32.totalorder %s420_s24, %s420_s24 }
   0xc   :  { %p427_p6 = por %p426_p5, %p425_p4 }
   0xe   :  { %p428_p7 = pnand %p427_p6, %p421_p3 }
  0x10   :  { %431 = shalt.err (!%p428_p7)
}
  0x11   :  { %s483_s25 = smov 64   ;;  %s484_s26 = smov 4  }
  0x12   :  { %23 = dma.hbm_to_vmem [thread:$0]  %s594_s0, 256, %s18_s16, [#allocation3], %s483_s25, %s483_s25, %s484_s26  }
  0x13   :  { %s485_s29 = smov [#allocation5]   ;;  %s432_s7 = scalar_lea.hbm %s595_s1, 256 }
  0x14   :  { %s29_s30 = sshll.u32 %s485_s29, 4  ;;  %p433_p8 = scmp.ne.s32.totalorder %s595_s1, %s432_s7  ;;  %s30_s30 = int_to_ptr.vmem [resolvable:$true] %s29_s30 }
  0x15   :  { %p436_p9 = scmp.lt.u32.totalorder %s432_s7, %s595_s1 }
  0x17   :  { %p438_p10 = pnand %p436_p9, %p433_p8 }
  0x19   :  { %441 = shalt.err (!%p438_p10)
}
  0x1a   :  { %s442_s12 = scalar_lea.vmem %s30_s30, 256  ;;  %p447_p12 = scmp.lt.s32.totalorder %s30_s30, %s30_s30 }
  0x1b   :  { %p443_p11 = scmp.ne.s32.totalorder %s30_s30, %s442_s12  ;;  %p448_p13 = scmp.lt.s32.totalorder %s442_s12, %s442_s12 }
  0x1d   :  { %p449_p0 = por %p448_p13, %p447_p12 }
  0x1f   :  { %p450_p1 = pnand %p449_p0, %p443_p11 }
  0x21   :  { %453 = shalt.err (!%p450_p1)
}
  0x22   :  { %35 = dma.hbm_to_vmem [thread:$0]  %s595_s1, 256, %s30_s30, [#allocation6], %s483_s25, %s483_s25, %s484_s26  }
  0x23   :  { %476 = dma.done.wait [#allocation3], 256  }
  0x24   :  { %477 = vsyncadd [#allocation3], 4294967040 }
  0x25   :  { %478 = dma.done.wait [#allocation6], 256  }
  0x26   :  { %479 = vsyncadd [#allocation6], 4294967040  ;;  %v382_v0 = vld [vmem:[#allocation5] sm:$0xff]   ;;  %v383_v1 = vld [vmem:[#allocation5 + $0x8] sm:$0xff]   ;;  %vm84_vm0 = vcmask 261120   ;;  %v171_v26 = vlaneseq  ;;  %vm189_vm1 = vcmask 1041409  }
  0x27   :  { %366 = vmatprep.subr.bf16.mxu0 %v382_v0  ;;  %v384_v2 = vld [vmem:[#allocation2] sm:$0xff]   ;;  %v385_v3 = vld [vmem:[#allocation2 + $0x8] sm:$0xff]   ;;  %vm191_vm2 = vcmask 1042434   ;;  %vm193_vm3 = vcmask 1043459   ;;  %vm196_vm4 = vcmask 60416   ;;  %v486_v42 = vmov 0  }
  0x28   :  { %367 = vmatpush3.bf16.msra.mxu0 %v382_v0  ;;  %370 = vmatprep.mubr.msk.bf16.mxu0 %vm84_vm0, %v384_v2  ;;  %v354_v4 = vld [vmem:[%s596_s2] ss:$0 sm:$0xff]  ;;  %v172_v27 = vand.u32 127, %v171_v26  ;;  %v549_v28 = vshrl.u32 %v171_v26, 7  ;;  %s487_s2 = smov [#allocation7]  }
  0x29   :  { %368 = vmatprep.subr.bf16.mxu0 %v383_v1  ;;  %v361_v13 = vld [vmem:[%s597_s3] ss:$0 sm:$0xff]  ;;  %381 = vset.pattern.permute.xlu0 %v486_v42  ;;  %s344_s3 = sshll.u32 %s487_s2, 4  ;;  %s345_s3 = int_to_ptr.vmem [resolvable:$true] %s344_s3 }
  0x2a   :  { %v552_v31 = vsub.s32 %v172_v27, %v549_v28  ;;  %380 = vset.pattern.permute.xlu1 %v486_v42  ;;  %v203_v43 = vsub.s32 0, %v549_v28  ;;  %v207_v44 = vsub.s32 1, %v549_v28  ;;  %v211_v45 = vsub.s32 2, %v549_v28  ;;  %s454_s17 = scalar_lea.vmem %s345_s3, 64  ;;  %p459_p3 = scmp.lt.s32.totalorder %s345_s3, %s345_s3 }
  0x2b   :  { %v215_v46 = vsub.s32 3, %v549_v28  ;;  %p455_p2 = scmp.ne.s32.totalorder %s345_s3, %s454_s17  ;;  %p460_p4 = scmp.lt.s32.totalorder %s454_s17, %s454_s17 }
  0x2c   :  { %369 = vmatpush3.bf16.msra.mxu0 %v383_v1 }
  0x2d   :  { %p461_p5 = por %p460_p4, %p459_p3 }
  0x2f   :  { %371 = vmatmul.mubr.msk.bf16.vlgmr.msra.gmra.mrb[0].mxu0 %vm84_vm0, %v385_v3  ;;  %p462_p6 = pnand %p461_p5, %p455_p2 }
 0x102   :  { %v372_v5 = vpop.f32.mrb[0].mxu0 }
 0x103   :  { %v134_v6 = vadd.f32 %v372_v5, %v354_v4  ;;  %v125_v7 = vpop.f32.mrb[1].mxu0 }
 0x104   :  { %v126_v8 = vadd.f32 %v354_v4, %v125_v7  ;;  %v373_v9 = vpop.f32.mrb[2].mxu0 }
 0x105   :  { %386 = vtanh.f32 %v134_v6  ;;  %v137_v10 = vadd.f32 %v373_v9, %v354_v4  ;;  %v128_v11 = vpop.f32.mrb[3].mxu0 }
 0x106   :  { %388 = vtanh.f32 %v126_v8  ;;  %v129_v12 = vadd.f32 %v354_v4, %v128_v11 }
 0x107   :  { %390 = vtanh.f32 %v137_v10 }
 0x108   :  { %392 = vtanh.f32 %v129_v12 }
 0x10f   :  { %v387_v14 = vpop.eup %386 }
 0x110   :  { %v389_v15 = vpop.eup %388  ;;  %v153_v16 = vmul.f32 %v387_v14, %v361_v13 }
 0x111   :  { %v391_v17 = vpop.eup %390  ;;  %v151_v18 = vmul.f32 %v389_v15, %v361_v13 }
 0x112   :  { %v393_v19 = vpop.eup %392  ;;  %v161_v20 = vsel %vm84_vm0, %v153_v16, 0.0  ;;  %v154_v21 = vmul.f32 %v391_v17, %v361_v13 }
 0x113   :  { %162 = vadd.xlane.f32.xlu1 %v161_v20  ;;  %v155_v22 = vsel %vm84_vm0, %v151_v18, 0.0  ;;  %v152_v23 = vmul.f32 %v393_v19, %v361_v13 }
 0x114   :  { %156 = vadd.xlane.f32.xlu0 %v155_v22  ;;  %v164_v24 = vsel %vm84_vm0, %v154_v21, 0.0 }
 0x115   :  { %v158_v25 = vsel %vm84_vm0, %v152_v23, 0.0 }
 0x117   :  { %165 = vadd.xlane.f32.xlu1 %v164_v24 }
 0x118   :  { %159 = vadd.xlane.f32.xlu0 %v158_v25 }
 0x1a0   :  { %v163_v29 = vpop.xlane.xlu1 %162 }
 0x1a1   :  { %v157_v30 = vpop.xlane.xlu0 %156  ;;  %v184_v36 = vrot.slane %v163_v29, %v552_v31 }
 0x1a2   :  { %v176_v34 = vrot.slane %v157_v30, %v552_v31 }
 0x1a4   :  { %v166_v32 = vpop.xlane.xlu1 %165 }
 0x1a5   :  { %v160_v33 = vpop.xlane.xlu0 %159  ;;  %v188_v37 = vrot.slane %v166_v32, %v552_v31 }
 0x1a6   :  { %v180_v35 = vrot.slane %v160_v33, %v552_v31 }
 0x1a8   :  { %v190_v38 = vsel %vm189_vm1, %v180_v35, %v176_v34 }
 0x1a9   :  { %v192_v39 = vsel %vm191_vm2, %v184_v36, %v190_v38 }
 0x1aa   :  { %v194_v40 = vsel %vm193_vm3, %v188_v37, %v192_v39 }
 0x1ab   :  { %v197_v41 = vsel %vm196_vm4, %v194_v40, -inf }
 0x1ac   :  { %198 = vmax.xlane.f32.xlu0 %v197_v41 }
 0x239   :  { %v199_v47 = vpop.xlane.xlu0 %198 }
 0x23a   :  { %v204_v48 = vrot.slane %v199_v47, %v203_v43  ;;  %v208_v49 = vrot.slane %v199_v47, %v207_v44  ;;  %v212_v50 = vrot.slane %v199_v47, %v211_v45  ;;  %v216_v51 = vrot.slane %v199_v47, %v215_v46 }
 0x23c   :  { %v221_v52 = vsub.f32 %v157_v30, %v204_v48  ;;  %v222_v53 = vsub.f32 %v160_v33, %v208_v49  ;;  %v223_v54 = vsub.f32 %v163_v29, %v212_v50  ;;  %v224_v57 = vsub.f32 %v166_v32, %v216_v51 }
 0x23e   :  { %v225_v55 = vmul.f32 1.442695, %v221_v52  ;;  %v227_v56 = vmul.f32 1.442695, %v222_v53  ;;  %v229_v58 = vmul.f32 1.442695, %v223_v54 }
 0x23f   :  { %v231_v59 = vmul.f32 1.442695, %v224_v57 }
 0x240   :  { %394 = vpow2.f32 %v225_v55 }
 0x241   :  { %396 = vpow2.f32 %v227_v56 }
 0x242   :  { %398 = vpow2.f32 %v229_v58 }
 0x243   :  { %400 = vpow2.f32 %v231_v59 }
 0x24a   :  { %v395_v60 = vpop.eup %394 }
 0x24b   :  { %v397_v61 = vpop.eup %396  ;;  %238 = vperm.xlu1 %380, %v395_v60  }
 0x24c   :  { %241 = vperm.xlu0 %381, %v397_v61   ;;  %v399_v62 = vpop.eup %398 }
 0x24d   :  { %v401_v63 = vpop.eup %400 }
 0x24f   :  { %244 = vperm.xlu1 %380, %v399_v62  }
 0x253   :  { %247 = vperm.xlu1 %380, %v401_v63  }
 0x2ca   :  { %v239_v0 = vpop.permute.xlu1 %238 }
 0x2cb   :  { %v242_v1 = vpop.permute.xlu0 %241  ;;  %v252_v4 = vrot.slane %v239_v0, %v552_v31 }
 0x2cc   :  { %v256_v3 = vrot.slane %v242_v1, %v552_v31 }
 0x2ce   :  { %v245_v2 = vpop.permute.xlu1 %244  ;;  %v265_v7 = vsel %vm189_vm1, %v256_v3, %v252_v4 }
 0x2cf   :  { %v260_v5 = vrot.slane %v245_v2, %v552_v31 }
 0x2d1   :  { %v266_v9 = vsel %vm191_vm2, %v260_v5, %v265_v7 }
 0x2d2   :  { %v248_v6 = vpop.permute.xlu1 %247 }
 0x2d3   :  { %v264_v8 = vrot.slane %v248_v6, %v552_v31 }
 0x2d5   :  { %v267_v10 = vsel %vm193_vm3, %v264_v8, %v266_v9 }
 0x2d6   :  { %v269_v11 = vsel %vm196_vm4, %v267_v10, 0.0 }
 0x2d7   :  { %270 = vadd.xlane.f32.xlu1 %v269_v11 }
 0x364   :  { %v271_v12 = vpop.xlane.xlu1 %270 }
 0x365   :  { %v276_v13 = vrot.slane %v271_v12, %v203_v43  ;;  %v280_v14 = vrot.slane %v271_v12, %v207_v44  ;;  %v284_v15 = vrot.slane %v271_v12, %v211_v45  ;;  %v288_v16 = vrot.slane %v271_v12, %v215_v46 }
 0x367   :  { %402 = vrcp.f32 %v276_v13 }
 0x368   :  { %404 = vrcp.f32 %v280_v14 }
 0x369   :  { %406 = vrcp.f32 %v284_v15 }
 0x36a   :  { %408 = vrcp.f32 %v288_v16 }
 0x371   :  { %v403_v17 = vpop.eup %402 }
 0x372   :  { %v294_v18 = vmul.f32 %v403_v17, %v395_v60  ;;  %v405_v19 = vpop.eup %404 }
 0x373   :  { %v296_v20 = vmul.f32 %v405_v19, %v397_v61  ;;  %v407_v21 = vpop.eup %406 }
 0x374   :  { %306 = vperm.xlu0 %381, %v294_v18   ;;  %v298_v22 = vmul.f32 %v407_v21, %v399_v62  ;;  %v409_v23 = vpop.eup %408 }
 0x375   :  { %v300_v24 = vmul.f32 %v409_v23, %v401_v63 }
 0x378   :  { %309 = vperm.xlu0 %381, %v296_v20  }
 0x37c   :  { %312 = vperm.xlu0 %381, %v298_v22  }
 0x380   :  { %315 = vperm.xlu0 %381, %v300_v24  }
 0x3f3   :  { %v307_v25 = vpop.permute.xlu0 %306 }
 0x3f4   :  { %v320_v30 = vrot.slane %v307_v25, %v552_v31 }
 0x3f7   :  { %v310_v26 = vpop.permute.xlu0 %309 }
 0x3f8   :  { %v324_v28 = vrot.slane %v310_v26, %v552_v31 }
 0x3fa   :  { %v333_v33 = vsel %vm189_vm1, %v324_v28, %v320_v30 }
 0x3fb   :  { %v313_v27 = vpop.permute.xlu0 %312 }
 0x3fc   :  { %v328_v29 = vrot.slane %v313_v27, %v552_v31 }
 0x3fe   :  { %v334_v35 = vsel %vm191_vm2, %v328_v29, %v333_v33 }
 0x3ff   :  { %v316_v32 = vpop.permute.xlu0 %315 }
 0x400   :  { %v332_v34 = vrot.slane %v316_v32, %v552_v31 }
 0x402   :  { %v335_v36 = vsel %vm193_vm3, %v332_v34, %v334_v35 }
 0x403   :  { %337 = vst.msk [vmem:[#allocation7] sm:$0xf] %vm196_vm4, %v335_v36 }
 0x404   :  { %465 = shalt.err (!%p462_p6)
}
 0x405   :  { %s466_s20 = scalar_lea.hbm %s598_s4, 64 }
 0x406   :  { %p467_p7 = scmp.ne.s32.totalorder %s598_s4, %s466_s20  ;;  %p470_p8 = scmp.lt.u32.totalorder %s466_s20, %s598_s4 }
 0x408   :  { %p472_p9 = pnand %p470_p8, %p467_p7 }
 0x40a   :  { %475 = shalt.err (!%p472_p9)
}
 0x40b   :  { %347 = dma.vmem_to_hbm [thread:$0]  %s345_s3, 64, %s598_s4, [#allocation4]  }
 0x40c   :  { %480 = dma.done.wait [#allocation4], 64  }
 0x40d   :  { %481 = vsyncadd [#allocation4], 4294967232 }
 0x40e   :  { %351 = vsyncpa [#allocation3], 1 }
 0x40f   :  { %352 = vsyncpa [#allocation6], 1 }
 0x410   :  { %353 = vsyncpa [#allocation4], 1 }

</bundles_post_ra>
